<compile_context>
chip_gen: v6e
topology: v6e:2x2x1
jax: 0.10.0
libtpu: 0.0.40
codegen_flags: <defaults>
</compile_context>

<pallas_src>
import jax
import jax.numpy as jnp
from jax.experimental import pallas as pl
from jax.experimental.pallas import tpu as pltpu


def _attention_kernel(mask_ref,        # (BB, 1, Tsp)  f32   additive length mask (0 / finfo.min)
                      q_ref,           # (BB*Tq, Hp)   bf16  queries, flattened over (batch, Tq)
                      enc_ref,         # (BB, Tsp, Hp) bf16  encoder outputs
                      w_in_t_ref,      # (Hp, Hp)      bf16  linear_in.weight.T   (padded)
                      w_out_q_t_ref,   # (Hp, Hp)      bf16  linear_out.weight[:, :H].T (padded)
                      w_out_c_t_ref,   # (Hp, Hp)      bf16  linear_out.weight[:, H:].T (padded)
                      b_out_ref,       # (1, Hp)       f32   linear_out.bias (padded)
                      out_ref):        # (BB*Tq, Hp)   f32
    BB, Ts, H = enc_ref.shape
    Tq = q_ref.shape[0] // BB

    q_bf = q_ref[...]                                   # bf16 straight from HBM (cast in wrapper)
    enc_bf = enc_ref[...]                               # (BB, Ts, H) bf16

    # z = linear_in(query): one dense (BB*Tq, Hp) x (Hp, Hp) MXU pass, f32 accumulation.
    z = jnp.dot(q_bf, w_in_t_ref[...], preferred_element_type=jnp.float32)
    z_bf = z.astype(jnp.bfloat16).reshape(BB, Tq, H)    # Tq is a sublane multiple -> cheap reshape

    # attn_scores[b,q,s] = sum_h z[b,q,h] * enc[b,s,h]   (contract last axes, no enc.T copy)
    scores = jnp.einsum("bqh,bsh->bqs", z_bf, enc_bf,
                        preferred_element_type=jnp.float32)          # (BB, Tq, Ts) f32

    # Additive length mask: 0 for valid source positions, finfo.min for padded ones.
    # Finite value -> zero-length / batch-pad rows stay NaN-free.
    scores = scores + mask_ref[...]                                  # (BB,1,Ts) broadcast over Tq

    # Softmax over the source axis (statistics kept in f32, denominator on the EUP).
    m = jnp.max(scores, axis=-1, keepdims=True)
    e = jnp.exp(scores - m)
    attn = e * pl.reciprocal(jnp.sum(e, axis=-1, keepdims=True), approx=True)

    # context = attn_weights @ encoder_outputs
    context = jnp.einsum("bqs,bsh->bqh", attn.astype(jnp.bfloat16), enc_bf,
                         preferred_element_type=jnp.float32)         # (BB, Tq, Hp)
    ctx_bf = context.astype(jnp.bfloat16).reshape(BB * Tq, H)

    # attn_out = tanh(linear_out(cat(query, context)))  — concat split into two matmuls.
    out = jnp.tanh(
        jnp.dot(q_bf, w_out_q_t_ref[...], preferred_element_type=jnp.float32)
        + jnp.dot(ctx_bf, w_out_c_t_ref[...], preferred_element_type=jnp.float32)
        + b_out_ref[...]
    )
    out_ref[...] = out.astype(out_ref.dtype)


def _choose_block_b(B, Tq, max_bb):
    """Pick (BB, B_pad): per-step batch block and padded batch size.

    Preferences (in order): minimal batch padding; >= 2 grid steps so the 'parallel'
    batch axis can use both TensorCores on v7x; larger BB (amortize ~0.35us/step).
    Constraint: if the grid has > 1 step, BB*Tq must be a multiple of 8 (sublane
    divisibility of the (BB*Tq, Hp) query/output blocks)."""
    best = None
    for bb in range(1, min(max_bb, B) + 1):
        b_pad = -(-B // bb) * bb
        steps = b_pad // bb
        if steps > 1 and (bb * Tq) % 8 != 0:
            continue
        key = (b_pad - B, 0 if steps >= 2 else 1, -bb)
        if best is None or key < best[0]:
            best = (key, bb, b_pad)
    if best is None:
        return B, B            # single-step fallback: full-batch block is always legal
    return best[1], best[2]


def attention_pallas(query, encoder_outputs, src_lengths, w_in, w_out, b_out,
                     *, block_b=8):
    """query: (B,Tq,H), encoder_outputs: (B,Ts,H), src_lengths: (B,) int,
    w_in: (H,H) [linear_in.weight], w_out: (H,2H) [linear_out.weight], b_out: (H,)."""
    B, Tq, H = query.shape
    _, Ts, _ = encoder_outputs.shape

    # Lane-dense padding: feature dim and source dim to multiples of 128.
    Hp = ((H + 127) // 128) * 128
    Tsp = ((Ts + 127) // 128) * 128

    # Batch blocking: minimal padding, >=2 grid steps when possible (v7x megacore).
    BB, B_pad = _choose_block_b(B, Tq, block_b)

    if B_pad != B:
        pad = B_pad - B
        query = jnp.pad(query, ((0, pad), (0, 0), (0, 0)))
        encoder_outputs = jnp.pad(encoder_outputs, ((0, pad), (0, 0), (0, 0)))
        src_lengths = jnp.pad(src_lengths, ((0, pad),))   # padded rows: length 0 (NaN-safe mask)
    if Hp != H:
        query = jnp.pad(query, ((0, 0), (0, 0), (0, Hp - H)))
        encoder_outputs = jnp.pad(encoder_outputs, ((0, 0), (0, 0), (0, Hp - H)))
    if Tsp != Ts:
        encoder_outputs = jnp.pad(encoder_outputs, ((0, 0), (0, Tsp - Ts), (0, 0)))

    # bf16 activations from HBM (halves the dominant DMA); f32 accumulation stays in-kernel.
    q2d = query.reshape(B_pad * Tq, Hp).astype(jnp.bfloat16)
    enc = encoder_outputs.astype(jnp.bfloat16)

    # Additive length mask bias: 0 where valid, finfo.min where padded (finite -> no NaN).
    neg = jnp.finfo(jnp.float32).min
    mask_bias = jnp.where(
        jnp.arange(Tsp, dtype=jnp.int32)[None, :] >= src_lengths.astype(jnp.int32)[:, None],
        neg, 0.0).astype(jnp.float32).reshape(B_pad, 1, Tsp)

    # Weights padded to (Hp, Hp), transposed, cast once to bf16 (MXU-native).
    w_in_t = jnp.pad(w_in, ((0, Hp - H), (0, Hp - H))).T.astype(jnp.bfloat16)
    w_out_q_t = jnp.pad(w_out[:, :H], ((0, Hp - H), (0, Hp - H))).T.astype(jnp.bfloat16)
    w_out_c_t = jnp.pad(w_out[:, H:], ((0, Hp - H), (0, Hp - H))).T.astype(jnp.bfloat16)
    b_out_2d = jnp.pad(b_out, ((0, Hp - H),)).reshape(1, Hp).astype(jnp.float32)

    # Advisory cost estimate so XLA schedules the surrounding pads/casts around the call.
    flops = 6 * B_pad * Tq * Hp * Hp + 4 * B_pad * Tq * Tsp * Hp
    transcendentals = B_pad * Tq * (Tsp + Hp + 1)
    bytes_accessed = (B_pad * Tq * Hp * 2            # query bf16
                      + B_pad * Tsp * Hp * 2         # encoder bf16
                      + B_pad * Tsp * 4              # mask bias
                      + 3 * Hp * Hp * 2 + Hp * 4     # weights + bias
                      + B_pad * Tq * Hp * 4)         # output f32
    cost = pl.CostEstimate(flops=flops, transcendentals=transcendentals,
                           bytes_accessed=bytes_accessed)

    out2d = pl.pallas_call(
        _attention_kernel,
        out_shape=jax.ShapeDtypeStruct((B_pad * Tq, Hp), jnp.float32),
        grid=(B_pad // BB,),
        in_specs=[
            pl.BlockSpec((BB, 1, Tsp), lambda b: (b, 0, 0)),     # additive length mask
            pl.BlockSpec((BB * Tq, Hp), lambda b: (b, 0)),       # query (flattened, bf16)
            pl.BlockSpec((BB, Tsp, Hp), lambda b: (b, 0, 0)),    # encoder_outputs (bf16)
            pl.BlockSpec((Hp, Hp), lambda b: (0, 0)),            # w_in_t   (resident)
            pl.BlockSpec((Hp, Hp), lambda b: (0, 0)),            # w_out_q_t (resident)
            pl.BlockSpec((Hp, Hp), lambda b: (0, 0)),            # w_out_c_t (resident)
            pl.BlockSpec((1, Hp), lambda b: (0, 0)),             # bias      (resident)
        ],
        out_specs=pl.BlockSpec((BB * Tq, Hp), lambda b: (b, 0)),
        compiler_params=pltpu.CompilerParams(
            dimension_semantics=("parallel",),                   # batch axis -> both TCs on v7x
            vmem_limit_bytes=64 * 1024 * 1024),                  # <= physical on v5e/v6e/v7x
        cost_estimate=cost,
    )(mask_bias, q2d, enc, w_in_t, w_out_q_t, w_out_c_t, b_out_2d)

    # Drop batch padding and the padded feature columns (they are exactly tanh(0)=0).
    return out2d.reshape(B_pad, Tq, Hp)[:B, :, :H]


def attention_reference(query, encoder_outputs, src_lengths, w_in, w_out, b_out):
    """Pure-JAX f32 reference mirroring the PyTorch forward exactly."""
    Ts = encoder_outputs.shape[1]
    z = query @ w_in.T
    scores = jnp.einsum("bqh,bsh->bqs", z, encoder_outputs)
    mask = jnp.arange(Ts)[None, :] >= src_lengths[:, None]          # (B, Ts) True = pad
    scores = jnp.where(mask[:, None, :], -jnp.inf, scores)
    w = jax.nn.softmax(scores, axis=-1)
    context = jnp.einsum("bqs,bsh->bqh", w, encoder_outputs)
    cat = jnp.concatenate([query, context], axis=-1)                # (B, Tq, 2H)
    return jnp.tanh(cat @ w_out.T + b_out)


if __name__ == "__main__":
    B, Tq, Ts, H = 2, 8, 8, 32

    key = jax.random.PRNGKey(0)
    k_q, k_e, k_win, k_wout, k_b = jax.random.split(key, 5)

    query = jax.random.normal(k_q, (B, Tq, H), dtype=jnp.float32)
    encoder_outputs = jax.random.normal(k_e, (B, Ts, H), dtype=jnp.float32)
    # max length equals Ts (same assumption the PyTorch module makes)
    src_lengths = jnp.array([Ts, Ts - 3], dtype=jnp.int32)

    # Deterministic parameter init (shapes from nn.Linear in __init__)
    w_in = jax.random.normal(k_win, (H, H), dtype=jnp.float32) * 0.1        # linear_in.weight
    w_out = jax.random.normal(k_wout, (H, 2 * H), dtype=jnp.float32) * 0.1  # linear_out.weight
    b_out = jax.random.normal(k_b, (H,), dtype=jnp.float32) * 0.1           # linear_out.bias

    out = attention_pallas(query, encoder_outputs, src_lengths, w_in, w_out, b_out)
    out = jax.block_until_ready(out)

    ref = attention_reference(query, encoder_outputs, src_lengths, w_in, w_out, b_out)
    assert out.shape == (B, Tq, H)
    assert bool(jnp.all(jnp.isfinite(out))), "non-finite values in kernel output"
    max_err = float(jnp.max(jnp.abs(out - ref)))
    # bf16 MXU operands with f32 accumulation -> loosened tolerance vs the f32 reference.
    assert jnp.allclose(out, ref, atol=2e-2, rtol=2e-2), f"mismatch vs reference (max abs err {max_err})"

    print("KERNEL_OK")
</pallas_src>

<mosaic_0001>
module attributes {stable_mosaic.version = 11 : i64} {
  func.func @_attention_kernel(%arg0: i32, %arg1: memref<1x1x128xf32, #tpu.memory_space<vmem>>, %arg2: memref<8x128xbf16, #tpu.memory_space<vmem>>, %arg3: memref<1x128x128xbf16, #tpu.memory_space<vmem>>, %arg4: memref<128x128xbf16, #tpu.memory_space<vmem>>, %arg5: memref<128x128xbf16, #tpu.memory_space<vmem>>, %arg6: memref<128x128xbf16, #tpu.memory_space<vmem>>, %arg7: memref<1x128xf32, #tpu.memory_space<vmem>>, %arg8: memref<8x128xf32, #tpu.memory_space<vmem>>) attributes {dimension_semantics = [#tpu.dimension_semantics<parallel>], iteration_bounds = array<i64: 2>, scalar_prefetch = 0 : i64, scratch_operands = 0 : i64, tpu.core_type = #tpu.core_type<tc>, window_params = [{transform_indices = @transform_0, window_bounds = array<i64: 1, 1, 128>}, {transform_indices = @transform_1, window_bounds = array<i64: 8, 128>}, {transform_indices = @transform_2, window_bounds = array<i64: 1, 128, 128>}, {pipeline_mode = #tpu.pipeline_mode<synchronous>, transform_indices = @transform_3, window_bounds = array<i64: 128, 128>}, {pipeline_mode = #tpu.pipeline_mode<synchronous>, transform_indices = @transform_4, window_bounds = array<i64: 128, 128>}, {pipeline_mode = #tpu.pipeline_mode<synchronous>, transform_indices = @transform_5, window_bounds = array<i64: 128, 128>}, {pipeline_mode = #tpu.pipeline_mode<synchronous>, transform_indices = @transform_6, window_bounds = array<i64: 1, 128>}, {transform_indices = @transform_7, window_bounds = array<i64: 8, 128>}]} {
    %c0 = arith.constant 0 : index
    %c0_0 = arith.constant 0 : index
    %0 = vector.load %arg2[%c0, %c0_0] : memref<8x128xbf16, #tpu.memory_space<vmem>>, vector<8x128xbf16>
    %c0_1 = arith.constant 0 : index
    %c0_2 = arith.constant 0 : index
    %c0_3 = arith.constant 0 : index
    %1 = vector.load %arg3[%c0_1, %c0_2, %c0_3] : memref<1x128x128xbf16, #tpu.memory_space<vmem>>, vector<1x128x128xbf16>
    %c0_4 = arith.constant 0 : index
    %c0_5 = arith.constant 0 : index
    %2 = vector.load %arg4[%c0_4, %c0_5] : memref<128x128xbf16, #tpu.memory_space<vmem>>, vector<128x128xbf16>
    %cst = arith.constant dense<0.000000e+00> : vector<8x128xf32>
    %3 = tpu.matmul %0, %2, %cst {dimension_numbers = #tpu.dot_dimension_numbers<[1], [0], [0], [1], [0, 0, 1, 1], [], []>} : vector<8x128xbf16>, vector<128x128xbf16>, vector<8x128xf32> -> vector<8x128xf32>
    %4 = arith.truncf %3 : vector<8x128xf32> to vector<8x128xbf16>
    %5 = vector.shape_cast %4 : vector<8x128xbf16> to vector<1x8x128xbf16>
    "tpu.trace_start"() <{level = 10 : i32, message = "bqh,bsh->bqs"}> : () -> ()
    %cst_6 = arith.constant dense<0.000000e+00> : vector<1x8x128xf32>
    %6 = tpu.matmul %5, %1, %cst_6 {dimension_numbers = #tpu.dot_dimension_numbers<[2], [2], [1], [1], [0, 0, 0, 1, 1, 1], [0], [0]>} : vector<1x8x128xbf16>, vector<1x128x128xbf16>, vector<1x8x128xf32> -> vector<1x8x128xf32>
    "tpu.trace_stop"() : () -> ()
    %c0_7 = arith.constant 0 : index
    %c0_8 = arith.constant 0 : index
    %c0_9 = arith.constant 0 : index
    %7 = vector.load %arg1[%c0_7, %c0_8, %c0_9] : memref<1x1x128xf32, #tpu.memory_space<vmem>>, vector<1x1x128xf32>
    %8 = vector.broadcast %7 : vector<1x1x128xf32> to vector<1x8x128xf32>
    %9 = arith.addf %6, %8 : vector<1x8x128xf32>
    %cst_10 = arith.constant dense<0xFF800000> : vector<1x8xf32>
    %10 = vector.multi_reduction <maximumf>, %9, %cst_10 [2] : vector<1x8x128xf32> to vector<1x8xf32>
    %11 = vector.shape_cast %10 : vector<1x8xf32> to vector<1x8x1xf32>
    %12 = vector.broadcast %11 : vector<1x8x1xf32> to vector<1x8x128xf32>
    %13 = arith.subf %9, %12 : vector<1x8x128xf32>
    %14 = math.exp %13 : vector<1x8x128xf32>
    %cst_11 = arith.constant dense<0.000000e+00> : vector<1x8xf32>
    %15 = vector.multi_reduction <add>, %14, %cst_11 [2] : vector<1x8x128xf32> to vector<1x8xf32>
    %16 = vector.shape_cast %15 : vector<1x8xf32> to vector<1x8x1xf32>
    %17 = tpu.reciprocal %16 {approx = true} : vector<1x8x1xf32> -> vector<1x8x1xf32>
    %18 = vector.broadcast %17 : vector<1x8x1xf32> to vector<1x8x128xf32>
    %19 = arith.mulf %14, %18 : vector<1x8x128xf32>
    %20 = arith.truncf %19 : vector<1x8x128xf32> to vector<1x8x128xbf16>
    "tpu.trace_start"() <{level = 10 : i32, message = "bqs,bsh->bqh"}> : () -> ()
    %cst_12 = arith.constant dense<0.000000e+00> : vector<1x8x128xf32>
    %21 = tpu.matmul %20, %1, %cst_12 {dimension_numbers = #tpu.dot_dimension_numbers<[2], [1], [1], [2], [0, 0, 0, 1, 1, 2], [0], [0]>} : vector<1x8x128xbf16>, vector<1x128x128xbf16>, vector<1x8x128xf32> -> vector<1x8x128xf32>
    "tpu.trace_stop"() : () -> ()
    %22 = arith.truncf %21 : vector<1x8x128xf32> to vector<1x8x128xbf16>
    %23 = vector.shape_cast %22 : vector<1x8x128xbf16> to vector<8x128xbf16>
    %c0_13 = arith.constant 0 : index
    %c0_14 = arith.constant 0 : index
    %24 = vector.load %arg5[%c0_13, %c0_14] : memref<128x128xbf16, #tpu.memory_space<vmem>>, vector<128x128xbf16>
    %cst_15 = arith.constant dense<0.000000e+00> : vector<8x128xf32>
    %25 = tpu.matmul %0, %24, %cst_15 {dimension_numbers = #tpu.dot_dimension_numbers<[1], [0], [0], [1], [0, 0, 1, 1], [], []>} : vector<8x128xbf16>, vector<128x128xbf16>, vector<8x128xf32> -> vector<8x128xf32>
    %c0_16 = arith.constant 0 : index
    %c0_17 = arith.constant 0 : index
    %26 = vector.load %arg6[%c0_16, %c0_17] : memref<128x128xbf16, #tpu.memory_space<vmem>>, vector<128x128xbf16>
    %cst_18 = arith.constant dense<0.000000e+00> : vector<8x128xf32>
    %27 = tpu.matmul %23, %26, %cst_18 {dimension_numbers = #tpu.dot_dimension_numbers<[1], [0], [0], [1], [0, 0, 1, 1], [], []>} : vector<8x128xbf16>, vector<128x128xbf16>, vector<8x128xf32> -> vector<8x128xf32>
    %28 = arith.addf %25, %27 : vector<8x128xf32>
    %c0_19 = arith.constant 0 : index
    %c0_20 = arith.constant 0 : index
    %29 = vector.load %arg7[%c0_19, %c0_20] : memref<1x128xf32, #tpu.memory_space<vmem>>, vector<1x128xf32>
    %30 = vector.broadcast %29 : vector<1x128xf32> to vector<8x128xf32>
    %31 = arith.addf %28, %30 : vector<8x128xf32>
    %32 = math.tanh %31 : vector<8x128xf32>
    %c0_21 = arith.constant 0 : index
    %c0_22 = arith.constant 0 : index
    %33 = vector.load %arg8[%c0_21, %c0_22] : memref<8x128xf32, #tpu.memory_space<vmem>>, vector<8x128xf32>
    tpu.vector_store %arg8[%c0_21, %c0_22], %32 {strides = array<i32>} : memref<8x128xf32, #tpu.memory_space<vmem>>, vector<8x128xf32>,
    return
  }
  func.func @transform_0(%arg0: i32) -> (i32, i32, i32) {
    %c0_i32 = arith.constant 0 : i32
    %c0_i32_0 = arith.constant 0 : i32
    %c0_i32_1 = arith.constant 0 : i32
    return %arg0, %c0_i32, %c0_i32_0 : i32, i32, i32
  }
  func.func @transform_1(%arg0: i32) -> (i32, i32) {
    %c0_i32 = arith.constant 0 : i32
    %c0_i32_0 = arith.constant 0 : i32
    return %arg0, %c0_i32 : i32, i32
  }
  func.func @transform_2(%arg0: i32) -> (i32, i32, i32) {
    %c0_i32 = arith.constant 0 : i32
    %c0_i32_0 = arith.constant 0 : i32
    %c0_i32_1 = arith.constant 0 : i32
    return %arg0, %c0_i32, %c0_i32_0 : i32, i32, i32
  }
  func.func @transform_3(%arg0: i32) -> (i32, i32) {
    %c0_i32 = arith.constant 0 : i32
    %c0_i32_0 = arith.constant 0 : i32
    %c0_i32_1 = arith.constant 0 : i32
    return %c0_i32, %c0_i32_0 : i32, i32
  }
  func.func @transform_4(%arg0: i32) -> (i32, i32) {
    %c0_i32 = arith.constant 0 : i32
    %c0_i32_0 = arith.constant 0 : i32
    %c0_i32_1 = arith.constant 0 : i32
    return %c0_i32, %c0_i32_0 : i32, i32
  }
  func.func @transform_5(%arg0: i32) -> (i32, i32) {
    %c0_i32 = arith.constant 0 : i32
    %c0_i32_0 = arith.constant 0 : i32
    %c0_i32_1 = arith.constant 0 : i32
    return %c0_i32, %c0_i32_0 : i32, i32
  }
  func.func @transform_6(%arg0: i32) -> (i32, i32) {
    %c0_i32 = arith.constant 0 : i32
    %c0_i32_0 = arith.constant 0 : i32
    %c0_i32_1 = arith.constant 0 : i32
    return %c0_i32, %c0_i32_0 : i32, i32
  }
  func.func @transform_7(%arg0: i32) -> (i32, i32) {
    %c0_i32 = arith.constant 0 : i32
    %c0_i32_0 = arith.constant 0 : i32
    return %arg0, %c0_i32 : i32, i32
  }
}

</mosaic_0001>

<bundles_post_ra>
// kernel: tpu_custom_call.1
= control target key start
LH: loop header
LB: loop body
LE: loop exit
PB: predicated region body
PF: predicated region fallthrough
CT: control target
= control target key end

     0   :  { %s2006_s0 = inlined_call_operand.hbm [shape: f32[2,1,128], index: 0, kind: input, shape index: {}]   ;;  %s2007_s1 = inlined_call_operand.hbm [shape: bf16[16,128], index: 1, kind: input, shape index: {}]   ;;  %s2008_s2 = inlined_call_operand.hbm [shape: bf16[2,128,128], index: 2, kind: input, shape index: {}]   ;;  %s2009_s3 = inlined_call_operand.hbm [shape: bf16[128,128], index: 3, kind: input, shape index: {}]   ;;  %s2010_s4 = inlined_call_operand.hbm [shape: bf16[128,128], index: 4, kind: input, shape index: {}]   ;;  %s2011_s5 = inlined_call_operand.hbm [shape: bf16[128,128], index: 5, kind: input, shape index: {}]   ;;  %s2012_s6 = inlined_call_operand.vmem [shape: f32[1,128], index: 6, kind: input, shape index: {}]   ;;  %s2013_s7 = inlined_call_operand.hbm [shape: f32[16,128], index: 7, kind: output, shape index: {}]  }
   0x1   :  { %2029 = sst [smem:[#allocation23_spill]] %s2007_s1 }
   0x2   :  { %2030 = sst [smem:[#allocation24_spill]] %s2009_s3 }
   0x3   :  { %2031 = sst [smem:[#allocation25_spill]] %s2010_s4 }
   0x4   :  { %12 = vsyncpa [#allocation3], 0 }
   0x5   :  { %14 = vsyncpa [#allocation3 + $0x1], 0 }
   0x6   :  { %15 = vsyncpa [#allocation6], 0 }
   0x7   :  { %17 = vsyncpa [#allocation6 + $0x1], 0 }
   0x8   :  { %18 = vsyncpa [#allocation9], 0 }
   0x9   :  { %19 = vsyncpa [#allocation12], 0 }
   0xa   :  { %20 = vsyncpa [#allocation4], 0 }
   0xb   :  { %22 = vsyncpa [#allocation4 + $0x1], 0  ;;  %s1672_s24 = smov 0   ;;  %s1674_s25 = smov 0  }
   0xc   :  { %s1676_s26 = smov 0   ;;  %s1678_s27 = smov 0  }
   0xd LB: > { %2032 = sst [smem:[#allocation19_spill]] %s1615_s26  ;;  %s1693_s28 = sadd.s32 4294967295, %s1619_s27   ;;  %s1619_s27 = sphi %s1678_s27, %s2062_s27   ;;  %s1615_s26 = sphi %s1676_s26, %s2064_s26   ;;  %s1611_s25 = sphi %s1674_s25, %s2066_s25   ;;  %s1607_s24 = sphi %s1672_s24, %s2065_s24  }
   0xe   : > { %s1049_s29 = sadd.s32 4294967294, %s1619_s27   ;;  %p48_p0 = scmp.ne.s32.totalorder %s1611_s25, %s1607_s24 }
   0xf   : > { %p2019_p1 = scmp.eq.s32.totalorder %s1693_s28, 0  ;;  %p208_p2 = scmp.eq.s32.totalorder %s1693_s28, 1 }
  0x10   : > { %p214_p3 = scmp.eq.s32.totalorder %s1049_s29, 1  ;;  %p1050_p5 = scmp.ge.s32.totalorder %s1619_s27, 1 }
  0x11   : > { %p1702_p4 = por %p2019_p1, %p48_p0  ;;  %p221_p7 = scmp.lt.s32.totalorder %s1619_s27, 3 }
  0x12   : > { %p1707_p6 = por %p214_p3, %p48_p0  ;;  %s1621_s10 = smov [#allocation8]  }
  0x13   : > { %s2033_s30 = scalar_select %p1702_p4, 1, 0 }
  0x14   : > { %s2034_s8 = scalar_select %p1707_p6, 1, 0 }
  0x15   : > { %p1712_p8 = pnand %p1050_p5, %p221_p7  ;;  %s233_s11 = sshll.u32 %s1621_s10, 4  ;;  %s234_s11 = int_to_ptr.vmem [resolvable:$true] %s233_s11 }
  0x16   : > { %2035 = sst [smem:[#allocation20_spill]] %s2034_s8  ;;  %s1726_s13 = sadd.s32 1, %s1619_s27  }
  0x17   : > { %s2036_s9 = scalar_select %p1712_p8, 1, 0 }
  0x18   : > { %p1272_p9 = pneg %p1712_p8  ;;  %2038 = sst [smem:[#allocation21_spill]] %s1726_s13 }
  0x19   : > { %s35_s14 = sadd.s32 1, %s1615_s26  ;;  %s32_s15 = ssub.s32 %s1619_s27, %s1726_s13 }
  0x1a   : > { %p1721_p11 = pnand %p1272_p9, %p2019_p1  ;;  %s1392_s16 = scalar_lea.vmem %s234_s11, 1024 }
  0x1b   : > { %p1393_p13 = scmp.ne.s32.totalorder %s234_s11, %s1392_s16  ;;  %p1400_p5 = scmp.lt.s32.totalorder %s234_s11, %s234_s11 }
  0x1c   : > { %s2037_s12 = scalar_select %p1721_p11, 1, 0 }
  0x1d   : > { %p2020_p12 = pneg %p1721_p11  ;;  %p1401_p7 = scmp.lt.s32.totalorder %s1392_s16, %s1392_s16 }
  0x1f   : > { %p1395_p0 = pnand %p1393_p13, %p2020_p12  ;;  %p1402_p9 = por %p1401_p7, %p1400_p5 }
  0x21   : > { %p1396_p3 = pneg %p1395_p0 }
  0x23   : > { %p1403_p10 = pnand %p1402_p9, %p1396_p3 }
  0x25   : > { %1406 = shalt.err (!%p1403_p10)
}
  0x26   : > { %s2014_s17 = smov 64   ;;  %s2016_s18 = smov 4  }
  0x27   : > { %s2039_s3 = sld [smem:[#allocation24_spill]]  ;;  %p33_p10 = scmp.eq.s32.totalorder %s32_s15, 0 }
  0x28   : > { %p42_p13 = scmp.ne.s32.totalorder %s1615_s26, %s1611_s25  ;;  %p43_p0 = scmp.eq.s32.totalorder %s1619_s27, 0 }
  0x29   : > { %p1299_p3 = scmp.lt.s32.totalorder %s1619_s27, 2  ;;  %s1758_s23 = sand.u32 1, %s1615_s26  }
  0x2a   : > { %s1749_s21 = scalar_select %p33_p10, %s1615_s26, %s35_s14  }
  0x2b   : > { %p44_p5 = por %p43_p0, %p42_p13  ;;  %p1753_p7 = por %p208_p2, %p42_p13 }
  0x2c   : > { %2040 = sst [smem:[#allocation22_spill]] %s1749_s21  ;;  %s293_s29 = sand.u32 1, %s1619_s27  }
  0x2d   : > { %1275 = dma.hbm_to_vmem [thread:$0]  (!%p1721_p11), %s2039_s3, 1024, %s234_s11, [#allocation9], %s2014_s17, %s2014_s17, %s2016_s18  }
  0x2e   : > { %s2041_s22 = scalar_select %p1753_p7, 1, 0 }
  0x2f   : > { %p1761_p9 = pnand %p1299_p3, %p44_p5  ;;  %s1056_s11 = sshll.u32 %s1758_s23, 2 }
  0x30   : > { %s1057_s15 = sshll.u32 %s1619_s27, 6  ;;  %s2043_s1 = sld [smem:[#allocation23_spill]] }
  0x31   : > { %s297_s20 = scalar_lea.vmem [#allocation5], %s1056_s11  ;;  %s1773_s3 = scalar_lea.sflag [#allocation6], %s293_s29 }
  0x32   : > { %s304_s17 = sshll.u32 %s297_s20, 4  ;;  %p1779_p10 = pneg %p1761_p9  ;;  %s305_s17 = int_to_ptr.vmem [resolvable:$true] %s304_s17 }
  0x36   : > { %s1770_s19 = scalar_lea.hbm %s2043_s1, %s1057_s15  ;;  %s1412_s11 = scalar_lea.hbm %s2043_s1, 128 }
  0x37   : > { %s1407_s21 = scalar_lea.hbm %s1770_s19, 64  ;;  %p1413_p3 = scmp.lt.s32.totalorder %s1770_s19, %s2043_s1 }
  0x38   : > { %p1408_p2 = scmp.ne.s32.totalorder %s1770_s19, %s1407_s21  ;;  %p1414_p5 = scmp.lt.s32.totalorder %s1412_s11, %s1407_s21 }
  0x3a   : > { %p1410_p13 = pnand %p1779_p10, %p1408_p2  ;;  %p1415_p1 = por %p1414_p5, %p1413_p3 }
  0x3c   : > { %p1411_p0 = pneg %p1410_p13 }
  0x3e   : > { %p1416_p12 = pnand %p1415_p1, %p1411_p0 }
  0x40   : > { %1419 = shalt.err (!%p1416_p12)
}
  0x41   : > { %s1420_s29 = scalar_lea.vmem %s305_s17, 64  ;;  %s1624_s18 = smov [#allocation5]  }
  0x42   : > { %p1421_p6 = scmp.ne.s32.totalorder %s305_s17, %s1420_s29  ;;  %s1425_s13 = sshll.u32 %s1624_s18, 4  ;;  %s1426_s13 = int_to_ptr.vmem [resolvable:$false] %s1425_s13 }
  0x43   : > { %s1427_s8 = scalar_lea.vmem %s1426_s13, 128  ;;  %p1428_p2 = scmp.lt.s32.totalorder %s305_s17, %s1426_s13 }
  0x44   : > { %p1423_p7 = pnand %p1421_p6, %p1779_p10  ;;  %p1429_p13 = scmp.lt.s32.totalorder %s1427_s8, %s1420_s29 }
  0x46   : > { %p1424_p4 = pneg %p1423_p7  ;;  %p1430_p8 = por %p1429_p13, %p1428_p2 }
  0x48   : > { %p1431_p11 = pnand %p1430_p8, %p1424_p4 }
  0x4a   : > { %1434 = shalt.err (!%p1431_p11)
}
  0x4b   : > { %1288 = dma.hbm_to_vmem [thread:$0]  (!%p1761_p9), %s1770_s19, 64, %s305_s17, %s1773_s3  }
  0x4c   : > { %s1625_s21 = smov [#allocation10]   ;;  %s1626_s14 = smov [#allocation11]  }
  0x4d   : > { %s246_s15 = sshll.u32 %s1625_s21, 4  ;;  %s259_s11 = sshll.u32 %s1626_s14, 4  ;;  %s247_s15 = int_to_ptr.vmem [resolvable:$true] %s246_s15  ;;  %s260_s11 = int_to_ptr.vmem [resolvable:$true] %s259_s11 }
  0x4e   : > { %s1446_s18 = scalar_lea.vmem %s247_s15, 1024  ;;  %p2045_p6 = scmp.ne.s32.totalorder %s2037_s12, 0 }
  0x4f   : > { %p1447_p1 = scmp.ne.s32.totalorder %s247_s15, %s1446_s18  ;;  %p1454_p4 = scmp.lt.s32.totalorder %s247_s15, %s247_s15 }
  0x50   : > { %p2046_p12 = pneg %p2045_p6  ;;  %p1455_p8 = scmp.lt.s32.totalorder %s1446_s18, %s1446_s18 }
  0x52   : > { %p1449_p7 = pnand %p1447_p1, %p2046_p12  ;;  %p1456_p11 = por %p1455_p8, %p1454_p4 }
  0x54   : > { %p1450_p0 = pneg %p1449_p7 }
  0x56   : > { %p1457_p3 = pnand %p1456_p11, %p1450_p0 }
  0x58   : > { %1460 = shalt.err (!%p1457_p3)
}
  0x59   : > { %s2047_s8 = smov 4   ;;  %s2048_s13 = smov 64  }
  0x5a   : > { %s2049_s4 = sld [smem:[#allocation25_spill]]  ;;  %s1472_s16 = scalar_lea.vmem %s260_s11, 1024 }
  0x5b   : > { %p1473_p5 = scmp.ne.s32.totalorder %s260_s11, %s1472_s16  ;;  %p2050_p2 = pmov %p2046_p12 }
  0x5c   : > { %p1480_p12 = scmp.lt.s32.totalorder %s260_s11, %s260_s11  ;;  %p1481_p7 = scmp.lt.s32.totalorder %s1472_s16, %s1472_s16 }
  0x5d   : > { %p1475_p13 = pnand %p1473_p5, %p2050_p2 }
  0x5e   : > { %p1482_p0 = por %p1481_p7, %p1480_p12 }
  0x5f   : > { %p1476_p1 = pneg %p1475_p13 }
  0x60   : > { %1278 = dma.hbm_to_vmem [thread:$0]  (!%p2045_p6), %s2049_s4, 1024, %s247_s15, [#allocation9], %s2048_s13, %s2048_s13, %s2047_s8  }
  0x61   : > { %p1483_p4 = pnand %p1482_p0, %p1476_p1 }
  0x63   : > { %1486 = shalt.err (!%p1483_p4)
}
  0x64   : > { %1281 = dma.hbm_to_vmem [thread:$0]  (!%p2045_p6), %s2011_s5, 1024, %s260_s11, [#allocation12], %s2048_s13, %s2048_s13, %s2047_s8  }
  0x65   : > { %s1055_s21 = sshll.u32 %s1619_s27, 4  ;;  %s279_s15 = scalar_lea.vmem [#allocation2], %s1758_s23 }
  0x66   : > { %s286_s14 = sshll.u32 %s279_s15, 4  ;;  %s284_s19 = scalar_lea.hbm %s2006_s0, %s1055_s21  ;;  %s287_s14 = int_to_ptr.vmem [resolvable:$true] %s286_s14 }
  0x67   : > { %s277_s12 = scalar_lea.sflag [#allocation3], %s1758_s23  ;;  %s1487_s16 = scalar_lea.hbm %s284_s19, 16 }
  0x68   : > { %p1488_p8 = scmp.ne.s32.totalorder %s284_s19, %s1487_s16  ;;  %s1492_s1 = scalar_lea.hbm %s2006_s0, 32 }
  0x69   : > { %p1493_p6 = scmp.lt.s32.totalorder %s284_s19, %s2006_s0  ;;  %p1494_p5 = scmp.lt.s32.totalorder %s1492_s1, %s1487_s16 }
  0x6a   : > { %p1490_p11 = pnand %p1488_p8, %p1779_p10 }
  0x6b   : > { %p1495_p2 = por %p1494_p5, %p1493_p6 }
  0x6c   : > { %p1491_p3 = pneg %p1490_p11 }
  0x6e   : > { %p1496_p13 = pnand %p1495_p2, %p1491_p3 }
  0x70   : > { %1499 = shalt.err (!%p1496_p13)
}
  0x71   : > { %s1500_s21 = scalar_lea.vmem %s287_s14, 16  ;;  %s1627_s15 = smov [#allocation2]  }
  0x72   : > { %p1501_p1 = scmp.ne.s32.totalorder %s287_s14, %s1500_s21  ;;  %s1505_s18 = sshll.u32 %s1627_s15, 4  ;;  %s1506_s18 = int_to_ptr.vmem [resolvable:$false] %s1505_s18 }
  0x73   : > { %s1507_s17 = scalar_lea.vmem %s1506_s18, 32  ;;  %p1508_p0 = scmp.lt.s32.totalorder %s287_s14, %s1506_s18 }
  0x74   : > { %p1503_p12 = pnand %p1501_p1, %p1779_p10  ;;  %p1509_p4 = scmp.lt.s32.totalorder %s1507_s17, %s1500_s21 }
  0x76   : > { %p1504_p7 = pneg %p1503_p12  ;;  %p1510_p8 = por %p1509_p4, %p1508_p0 }
  0x78   : > { %p1511_p11 = pnand %p1510_p8, %p1504_p7 }
  0x7a   : > { %1514 = shalt.err (!%p1511_p11)
}
  0x7b   : > { %1285 = dma.hbm_to_vmem [thread:$0]  (!%p1761_p9), %s284_s19, 16, %s287_s14, %s277_s12  }
  0x7c   : > { %s1106_s1 = sshll.u32 %s1619_s27, 10  ;;  %s2051_s29 = sshll.u32 %s1758_s23, 6 }
  0x7d   : > { %s1842_s20 = scalar_lea.hbm %s2008_s2, %s1106_s1  ;;  %s315_s11 = scalar_lea.vmem [#allocation7], %s2051_s29 }
  0x7e   : > { %s322_s21 = sshll.u32 %s315_s11, 4  ;;  %s1515_s15 = scalar_lea.hbm %s1842_s20, 1024  ;;  %s323_s21 = int_to_ptr.vmem [resolvable:$true] %s322_s21 }
  0x7f   : > { %p1516_p3 = scmp.ne.s32.totalorder %s1842_s20, %s1515_s15  ;;  %s1520_s19 = scalar_lea.hbm %s2008_s2, 2048 }
  0x80   : > { %p1521_p2 = scmp.lt.s32.totalorder %s1842_s20, %s2008_s2  ;;  %p1522_p13 = scmp.lt.s32.totalorder %s1520_s19, %s1515_s15 }
  0x81   : > { %p1518_p6 = pnand %p1516_p3, %p1779_p10 }
  0x82   : > { %p1523_p1 = por %p1522_p13, %p1521_p2 }
  0x83   : > { %p1519_p5 = pneg %p1518_p6 }
  0x85   : > { %p1524_p12 = pnand %p1523_p1, %p1519_p5 }
  0x87   : > { %1527 = shalt.err (!%p1524_p12)
}
  0x88   : > { %s1528_s23 = scalar_lea.vmem %s323_s21, 1024  ;;  %s1628_s1 = smov [#allocation7]  }
  0x89   : > { %p1529_p7 = scmp.ne.s32.totalorder %s323_s21, %s1528_s23  ;;  %s1533_s4 = sshll.u32 %s1628_s1, 4  ;;  %s1534_s4 = int_to_ptr.vmem [resolvable:$false] %s1533_s4 }
  0x8a   : > { %s1535_s16 = scalar_lea.vmem %s1534_s4, 2048  ;;  %p1536_p8 = scmp.lt.s32.totalorder %s323_s21, %s1534_s4 }
  0x8b   : > { %p1531_p0 = pnand %p1529_p7, %p1779_p10  ;;  %p1537_p11 = scmp.lt.s32.totalorder %s1535_s16, %s1528_s23 }
  0x8d   : > { %p1532_p4 = pneg %p1531_p0  ;;  %p1538_p3 = por %p1537_p11, %p1536_p8 }
  0x8f   : > { %p1539_p6 = pnand %p1538_p3, %p1532_p4 }
  0x91   : > { %1542 = shalt.err (!%p1539_p6)
}
  0x92   : > { %1291 = dma.hbm_to_vmem [thread:$0]  (!%p1761_p9), %s1842_s20, 1024, %s323_s21, %s1773_s3, %s2048_s13, %s2048_s13, %s2047_s8  }
  0x93   : > { %p2052_p10 = scmp.ne.s32.totalorder %s2036_s9, 0 }
  0x94   : > { %s1869_s26 = sand.u32 (!%p2052_p10), 1, %s1611_s25   ;;  %p2053_p5 = scmp.ne.s32.totalorder (!%p2052_p10), %s2033_s30, 0 }
  0x95   : > { %334 = sbr.rel (%p2052_p10) target bundleno = 1320 (0x528), region = 48  ;;  %s337_s29 = scalar_lea.sflag (!%p2052_p10), [#allocation3], %s1869_s26 }
  0x96   : > { %s339_s11 = scalar_lea.vmem (!%p2052_p10), [#allocation2], %s1869_s26 }
  0x9a   : > { %1586 = dma.done.wait (%p2053_p5), %s337_s29, 16  }
  0x9b   : > { %1588 = vsyncadd (%p2053_p5), %s337_s29, 4294967280  ;;  %s344_s3 = sand.u32 1, %s1693_s28   ;;  %s1062_s10 = sshll.u32 %s1869_s26, 2 }
  0x9c   : > { %s345_s9 = scalar_lea.sflag [#allocation6], %s344_s3  ;;  %s1879_s8 = scalar_lea.vmem [#allocation5], %s1062_s10 }
  0x9d   : > { %1590 = dma.done.wait (%p2053_p5), %s345_s9, 1088  }
  0x9e   : > { %1592 = vsyncadd (%p2053_p5), %s345_s9, 4294966208  ;;  %s1063_s13 = sshll.u32 %s1869_s26, 6  ;;  %p2054_p9 = scmp.eq.s32.totalorder %s1693_s28, 0 }
  0x9f   : > { %s1886_s20 = scalar_lea.vmem [#allocation7], %s1063_s13 }
  0xa0   : > { %1594 = dma.done.wait (%p2054_p9), [#allocation9], 2048   ;;  %p2055_p2 = pmov %p2054_p9 }
  0xa2   : > { %1596 = vsyncadd (%p2055_p2), [#allocation9], 4294965248  ;;  %p2056_p13 = pmov %p2055_p2 }
  0xa3   : > { %p2057_p1 = pmov %p2055_p2 }
  0xa4   : > { %1598 = dma.done.wait (%p2056_p13), [#allocation12], 1024  }
  0xa5   : > { %1600 = vsyncadd (%p2057_p1), [#allocation12], 4294966272  ;;  %v1629_v0 = vmov 0.0   ;;  %vm1630_vm0 = vmmov 0   ;;  %v1343_v1 = vld [vmem:[#allocation8 + $0x38] sm:$0xff]   ;;  %v1344_v2 = vld [vmem:[#allocation8 + $0x30] sm:$0xff]  }
  0xa6   : > { %1152 = vmatprep.subr.bf16.mxu0 %v1629_v0  ;;  %1168 = vmatprep.mubr.msk.bf16.mxu0 %vm1630_vm0, %v1629_v0  ;;  %v1345_v3 = vld [vmem:[#allocation8 + $0x28] sm:$0xff]   ;;  %v1351_v4 = vld [vmem:[%s1886_s20 + $0x38] sm:$0xff]   ;;  %v1346_v5 = vld [vmem:[#allocation8 + $0x20] sm:$0xff]   ;;  %s1067_s15 = sshll.u32 %s1869_s26, 3  ;;  %s1103_s18 = sshll.u32 %s1693_s28, 7 }
  0xa7   : > { %1172 = vmatprep.subr.bf16.mxu1 %v1629_v0  ;;  %1188 = vmatprep.mubr.msk.bf16.mxu1 %vm1630_vm0, %v1629_v0  ;;  %v1347_v6 = vld [vmem:[#allocation8 + $0x18] sm:$0xff]   ;;  %v1352_v7 = vld [vmem:[%s1886_s20 + $0x30] sm:$0xff]   ;;  %v1349_v9 = vld [vmem:[#allocation8 + $0x8] sm:$0xff]   ;;  %s408_s14 = scalar_lea.vmem [#allocation13], %s1067_s15  ;;  %s1969_s23 = scalar_lea.hbm %s2013_s7, %s1103_s18 }
  0xa8   : > { %1153 = vmatpush3.bf16.msra.mxu0 %v1343_v1  ;;  %1173 = vmatpush3.bf16.xpose.msra.mxu1 %v1351_v4  ;;  %v1348_v8 = vld [vmem:[#allocation8 + $0x10] sm:$0xff]   ;;  %v1353_v10 = vld [vmem:[%s1886_s20 + $0x28] sm:$0xff]   ;;  %v1350_v11 = vld [vmem:[#allocation8] sm:$0xff]   ;;  %s910_s19 = sshll.u32 %s408_s14, 4  ;;  %s897_s1 = scalar_lea.sflag [#allocation4], %s1869_s26  ;;  %s911_s19 = int_to_ptr.vmem [resolvable:$true] %s910_s19 }
  0xa9   : > { %1154 = vmatprep.subr.bf16.mxu0 %v1629_v0  ;;  %1174 = vmatprep.subr.bf16.mxu1 %v1629_v0  ;;  %v1916_v12 = vld [vmem:[%s1879_s8] sm:$0xf]  ;;  %v1354_v13 = vld [vmem:[%s1886_s20 + $0x20] sm:$0xff]   ;;  %v1356_v15 = vld [vmem:[%s1886_s20 + $0x10] sm:$0xff]   ;;  %s1543_s4 = scalar_lea.vmem %s911_s19, 128  ;;  %p2058_p7 = scmp.ne.s32.totalorder %s2041_s22, 0 }
  0xaa   : > { %v1355_v14 = vld [vmem:[%s1886_s20 + $0x18] sm:$0xff]   ;;  %v1357_v16 = vld [vmem:[%s1886_s20 + $0x8] sm:$0xff]   ;;  %v1358_v17 = vld [vmem:[%s1886_s20] sm:$0xff]   ;;  %p1544_p12 = scmp.ne.s32.totalorder %s911_s19, %s1543_s4  ;;  %s1631_s16 = smov [#allocation13]  }
  0xab   : > { %v1076_v23 = vld [vmem:[%s339_s11] ss:$0 sm:$0xff]  ;;  %v1359_v33 = vld [vmem:[#allocation10 + $0x38] sm:$0xff]   ;;  %v1362_v35 = vld [vmem:[#allocation10 + $0x28] sm:$0xff]   ;;  %s1547_s29 = sshll.u32 %s1631_s16, 4  ;;  %s1548_s29 = int_to_ptr.vmem [resolvable:$false] %s1547_s29 }
  0xac   : > { %1155 = vmatpush3.bf16.msra.mxu0 %v1344_v2  ;;  %v1360_v34 = vld [vmem:[#allocation10 + $0x30] sm:$0xff]   ;;  %v1364_v36 = vld [vmem:[#allocation10 + $0x20] sm:$0xff]   ;;  %v1366_v37 = vld [vmem:[#allocation10 + $0x18] sm:$0xff]   ;;  %p1545_p0 = pnand %p1544_p12, %p2058_p7  ;;  %s1549_s28 = scalar_lea.vmem %s1548_s29, 256 }
  0xad   : > { %1156 = vmatprep.subr.bf16.mxu0 %v1629_v0  ;;  %v1368_v38 = vld [vmem:[#allocation10 + $0x10] sm:$0xff]   ;;  %v1370_v39 = vld [vmem:[#allocation10 + $0x8] sm:$0xff]   ;;  %v1372_v40 = vld [vmem:[#allocation10] sm:$0xff]   ;;  %p1550_p8 = scmp.lt.s32.totalorder %s911_s19, %s1548_s29  ;;  %p1551_p11 = scmp.lt.s32.totalorder %s1549_s28, %s1543_s4 }
  0xae   : > { %v1361_v44 = vld [vmem:[#allocation11 + $0x38] sm:$0xff]   ;;  %v1363_v46 = vld [vmem:[#allocation11 + $0x30] sm:$0xff]   ;;  %v1365_v47 = vld [vmem:[#allocation11 + $0x28] sm:$0xff]   ;;  %p1546_p4 = pneg %p1545_p0 }
  0xaf   : > { %v1367_v48 = vld [vmem:[#allocation11 + $0x20] sm:$0xff]   ;;  %v1369_v49 = vld [vmem:[#allocation11 + $0x18] sm:$0xff]   ;;  %v1371_v50 = vld [vmem:[#allocation11 + $0x10] sm:$0xff]   ;;  %p1552_p3 = por %p1551_p11, %p1550_p8 }
  0xb0   : > { %1157 = vmatpush3.bf16.msra.mxu0 %v1345_v3  ;;  %1175 = vmatpush3.bf16.xpose.msra.mxu1 %v1352_v7  ;;  %v1373_v51 = vld [vmem:[#allocation11 + $0x8] sm:$0xff]   ;;  %v1374_v52 = vld [vmem:[#allocation11] sm:$0xff]   ;;  %v1101_v63 = vld [vmem:[%s2012_s6] ss:$0 sm:$0xff] }
  0xb1   : > { %1158 = vmatprep.subr.bf16.mxu0 %v1629_v0  ;;  %1176 = vmatprep.subr.bf16.mxu1 %v1629_v0  ;;  %p1553_p6 = pnand %p1552_p3, %p1546_p4 }
  0xb4   : > { %1159 = vmatpush3.bf16.msra.mxu0 %v1346_v5 }
  0xb5   : > { %1160 = vmatprep.subr.bf16.mxu0 %v1629_v0 }
  0xb8   : > { %1161 = vmatpush3.bf16.msra.mxu0 %v1347_v6  ;;  %1177 = vmatpush3.bf16.xpose.msra.mxu1 %v1353_v10 }
  0xb9   : > { %1162 = vmatprep.subr.bf16.mxu0 %v1629_v0  ;;  %1178 = vmatprep.subr.bf16.mxu1 %v1629_v0 }
  0xbc   : > { %1163 = vmatpush3.bf16.msra.mxu0 %v1348_v8 }
  0xbd   : > { %1164 = vmatprep.subr.bf16.mxu0 %v1629_v0 }
  0xc0   : > { %1165 = vmatpush3.bf16.msra.mxu0 %v1349_v9  ;;  %1179 = vmatpush3.bf16.xpose.msra.mxu1 %v1354_v13 }
  0xc1   : > { %1166 = vmatprep.subr.bf16.mxu0 %v1629_v0  ;;  %1180 = vmatprep.subr.bf16.mxu1 %v1629_v0 }
  0xc4   : > { %1167 = vmatpush3.bf16.msra.mxu0 %v1350_v11 }
  0xc5   : > { %1192 = vmatprep.subr.bf16.mxu0 %v1629_v0 }
  0xc7   : > { %1169 = vmatmul.mubr.bf16.vlgmr.msra.gmra.mxu0 %v1916_v12 }
  0xc8   : > { %1193 = vmatpush3.bf16.msra.mxu0 %v1351_v4  ;;  %1208 = vmatprep.mubr.msk.bf16.mxu0 %vm1630_vm0, %v1629_v0 }
  0xc9   : > { %1194 = vmatprep.subr.bf16.mxu0 %v1629_v0  ;;  %1181 = vmatpush3.bf16.xpose.msra.mxu1 %v1355_v14 }
  0xca   : > { %1182 = vmatprep.subr.bf16.mxu1 %v1629_v0 }
  0xcc   : > { %1195 = vmatpush3.bf16.msra.mxu0 %v1352_v7 }
  0xcd   : > { %1196 = vmatprep.subr.bf16.mxu0 %v1629_v0 }
  0xd0   : > { %1197 = vmatpush3.bf16.msra.mxu0 %v1353_v10 }
  0xd1   : > { %1198 = vmatprep.subr.bf16.mxu0 %v1629_v0  ;;  %1183 = vmatpush3.bf16.xpose.msra.mxu1 %v1356_v15 }
  0xd2   : > { %1184 = vmatprep.subr.bf16.mxu1 %v1629_v0 }
  0xd4   : > { %1199 = vmatpush3.bf16.msra.mxu0 %v1354_v13 }
  0xd5   : > { %1200 = vmatprep.subr.bf16.mxu0 %v1629_v0 }
  0xd8   : > { %1201 = vmatpush3.bf16.msra.mxu0 %v1355_v14 }
  0xd9   : > { %1202 = vmatprep.subr.bf16.mxu0 %v1629_v0  ;;  %1185 = vmatpush3.bf16.xpose.msra.mxu1 %v1357_v16 }
  0xda   : > { %1186 = vmatprep.subr.bf16.mxu1 %v1629_v0 }
  0xdc   : > { %1203 = vmatpush3.bf16.msra.mxu0 %v1356_v15 }
  0xdd   : > { %1204 = vmatprep.subr.bf16.mxu0 %v1629_v0 }
  0xe0   : > { %1205 = vmatpush3.bf16.msra.mxu0 %v1357_v16 }
  0xe1   : > { %1206 = vmatprep.subr.bf16.mxu0 %v1629_v0  ;;  %1187 = vmatpush3.bf16.xpose.msra.mxu1 %v1358_v17 }
  0xe2   : > { %1232 = vmatprep.subr.bf16.mxu1 %v1629_v0 }
  0xe4   : > { %1207 = vmatpush3.bf16.msra.mxu0 %v1358_v17 }
  0xe5   : > { %1212 = vmatprep.subr.bf16.mxu0 %v1629_v0 }
 0x187   : > { %v525_v18 = vpop.f32.mrf.mxu0 }
 0x188   : > { %v531_v19 = vpack.c.bf16 %v525_v18, %v525_v18 }
 0x189   : > { %v1170_v20 = vpop.f32.mrf.mxu0 }
 0x18a   : > { %1189 = vmatmul.mubr.bf16.vlgmr.msra.gmra.mxu1 %v531_v19 }
 0x18b   : > { %v528_v21 = vpop.f32.mrf.mxu0  ;;  %1248 = vmatprep.mubr.msk.bf16.mxu1 %vm1630_vm0, %v1629_v0  ;;  %1233 = vmatpush3.bf16.msra.mxu1 %v1359_v33 }
 0x18c   : > { %1234 = vmatprep.subr.bf16.mxu1 %v1629_v0 }
 0x18d   : > { %v1171_v22 = vpop.f32.mrf.mxu0 }
 0x18f   : > { %1235 = vmatpush3.bf16.msra.mxu1 %v1360_v34 }
 0x190   : > { %1236 = vmatprep.subr.bf16.mxu1 %v1629_v0 }
 0x193   : > { %1237 = vmatpush3.bf16.msra.mxu1 %v1362_v35 }
 0x194   : > { %1238 = vmatprep.subr.bf16.mxu1 %v1629_v0 }
 0x197   : > { %1239 = vmatpush3.bf16.msra.mxu1 %v1364_v36 }
 0x198   : > { %1240 = vmatprep.subr.bf16.mxu1 %v1629_v0 }
 0x19b   : > { %1241 = vmatpush3.bf16.msra.mxu1 %v1366_v37 }
 0x19c   : > { %1242 = vmatprep.subr.bf16.mxu1 %v1629_v0 }
 0x19f   : > { %1243 = vmatpush3.bf16.msra.mxu1 %v1368_v38 }
 0x1a0   : > { %1244 = vmatprep.subr.bf16.mxu1 %v1629_v0 }
 0x1a3   : > { %1245 = vmatpush3.bf16.msra.mxu1 %v1370_v39 }
 0x1a4   : > { %1246 = vmatprep.subr.bf16.mxu1 %v1629_v0 }
 0x1a7   : > { %1247 = vmatpush3.bf16.msra.mxu1 %v1372_v40 }
 0x1aa   : > { %1249 = vmatmul.mubr.bf16.vlgmr.msra.gmra.mxu1 %v1916_v12 }
 0x24a   : > { %v621_v24 = vpop.f32.mrf.mxu1 }
 0x24b   : > { %v622_v25 = vadd.f32 %v1076_v23, %v621_v24 }
 0x24c   : > { %v1190_v26 = vpop.f32.mrf.mxu1 }
 0x24d   : > { %627 = vmax.xlane.f32.xlu0 %v622_v25 }
 0x24e   : > { %v624_v27 = vpop.f32.mrf.mxu1 }
 0x250   : > { %v1191_v28 = vpop.f32.mrf.mxu1 }
 0x26a   : > { %v880_v53 = vpop.f32.mrf.mxu1 }
 0x26c   : > { %v1250_v54 = vpop.f32.mrf.mxu1 }
 0x26e   : > { %v883_v55 = vpop.f32.mrf.mxu1 }
 0x270   : > { %v1251_v56 = vpop.f32.mrf.mxu1 }
 0x2d6   : > { %v628_v29 = vpop.xlane.xlu0 %627 }
 0x2d7   : > { %v629_v30 = vsub.f32 %v622_v25, %v628_v29 }
 0x2d9   : > { %v630_v31 = vmul.f32 1.442695, %v629_v30 }
 0x2db   : > { %1375 = vpow2.f32 %v630_v31 }
 0x2e8   : > { %v1376_v32 = vpop.eup %1375 }
 0x2e9   : > { %632 = vadd.xlane.f32.xlu0 %v1376_v32 }
 0x372   : > { %v633_v41 = vpop.xlane.xlu0 %632 }
 0x373   : > { %1377 = vrcp.f32 %v633_v41 }
 0x380   : > { %v1378_v42 = vpop.eup %1377 }
 0x381   : > { %v635_v43 = vmul.f32 %v1378_v42, %v1376_v32 }
 0x383   : > { %v636_v45 = vpack.c.bf16 %v635_v43, %v635_v43 }
 0x385   : > { %1209 = vmatmul.mubr.bf16.vlgmr.msra.gmra.mxu0 %v636_v45 }
 0x386   : > { %1213 = vmatpush3.bf16.msra.mxu0 %v1361_v44  ;;  %1228 = vmatprep.mubr.msk.bf16.mxu0 %vm1630_vm0, %v1629_v0 }
 0x387   : > { %1214 = vmatprep.subr.bf16.mxu0 %v1629_v0 }
 0x38a   : > { %1215 = vmatpush3.bf16.msra.mxu0 %v1363_v46 }
 0x38b   : > { %1216 = vmatprep.subr.bf16.mxu0 %v1629_v0 }
 0x38e   : > { %1217 = vmatpush3.bf16.msra.mxu0 %v1365_v47 }
 0x38f   : > { %1218 = vmatprep.subr.bf16.mxu0 %v1629_v0 }
 0x392   : > { %1219 = vmatpush3.bf16.msra.mxu0 %v1367_v48 }
 0x393   : > { %1220 = vmatprep.subr.bf16.mxu0 %v1629_v0 }
 0x396   : > { %1221 = vmatpush3.bf16.msra.mxu0 %v1369_v49 }
 0x397   : > { %1222 = vmatprep.subr.bf16.mxu0 %v1629_v0 }
 0x39a   : > { %1223 = vmatpush3.bf16.msra.mxu0 %v1371_v50 }
 0x39b   : > { %1224 = vmatprep.subr.bf16.mxu0 %v1629_v0 }
 0x39e   : > { %1225 = vmatpush3.bf16.msra.mxu0 %v1373_v51 }
 0x39f   : > { %1226 = vmatprep.subr.bf16.mxu0 %v1629_v0 }
 0x3a2   : > { %1227 = vmatpush3.bf16.msra.mxu0 %v1374_v52 }
 0x445   : > { %v671_v57 = vpop.f32.mrf.mxu0 }
 0x446   : > { %v677_v58 = vpack.c.bf16 %v671_v57, %v671_v57 }
 0x447   : > { %v1210_v59 = vpop.f32.mrf.mxu0 }
 0x448   : > { %1229 = vmatmul.mubr.bf16.vlgmr.msra.gmra.mxu0 %v677_v58 }
 0x449   : > { %v674_v60 = vpop.f32.mrf.mxu0 }
 0x44b   : > { %v1211_v61 = vpop.f32.mrf.mxu0 }
 0x508   : > { %v792_v62 = vpop.f32.mrf.mxu0 }
 0x509   : > { %v881_v0 = vadd.f32 %v880_v53, %v792_v62 }
 0x50a   : > { %v1230_v1 = vpop.f32.mrf.mxu0 }
 0x50b   : > { %v893_v2 = vadd.f32 %v1101_v63, %v881_v0 }
 0x50c   : > { %v795_v3 = vpop.f32.mrf.mxu0 }
 0x50d   : > { %1379 = vtanh.f32 %v893_v2 }
 0x50e   : > { %v1231_v4 = vpop.f32.mrf.mxu0 }
 0x51a   : > { %v1380_v5 = vpop.eup %1379 }
 0x51b   : > { %895 = vst [vmem:[%s408_s14] sm:$0xff] %v1380_v5 }
 0x51c   : > { %1556 = shalt.err (!%p1553_p6)
}
 0x51d   : > { %s1557_s11 = scalar_lea.hbm %s1969_s23, 128  ;;  %s1561_s10 = scalar_lea.hbm %s2013_s7, 256 }
 0x51e   : > { %p1558_p10 = scmp.ne.s32.totalorder %s1969_s23, %s1557_s11  ;;  %p1562_p2 = scmp.lt.s32.totalorder %s1969_s23, %s2013_s7 }
 0x51f   : > { %p1563_p13 = scmp.lt.s32.totalorder %s1561_s10, %s1557_s11 }
 0x520   : > { %p1559_p5 = pnand %p1558_p10, %p2058_p7 }
 0x521   : > { %p1564_p1 = por %p1563_p13, %p1562_p2 }
 0x522   : > { %p1560_p9 = pneg %p1559_p5 }
 0x524   : > { %p1565_p12 = pnand %p1564_p1, %p1560_p9 }
 0x526   : > { %1568 = shalt.err (!%p1565_p12)
}
 0x527   : > { %1270 = dma.vmem_to_hbm [thread:$0]  (%p2058_p7), %s911_s19, 128, %s1969_s23, %s897_s1  }
 0x528 PF: > { %s2059_s13 = sld [smem:[#allocation20_spill]]  ;;  %s922_s20 = sand.u32 1, %s1607_s24  }
 0x529   : > { %p2061_p4 = scmp.ge.s32.totalorder %s1619_s27, 2  ;;  %s923_s30 = scalar_lea.sflag [#allocation4], %s922_s20 }
 0x52e   : > { %p2060_p0 = scmp.ne.s32.totalorder %s2059_s13, 0 }
 0x530   : > { %p1293_p8 = pnand %p2061_p4, %p2060_p0 }
 0x532   : > { %p1294_p11 = pneg %p1293_p8 }
 0x534   : > { %1602 = dma.done.wait (%p1294_p11), %s923_s30, 128  }
 0x535   : > { %1604 = vsyncadd (%p1294_p11), %s923_s30, 4294967168  ;;  %s2062_s27 = sld [smem:[#allocation21_spill]]  ;;  %s2065_s24 = smov %s1611_s25 }
 0x536   : > { %s2063_s21 = sld [smem:[#allocation19_spill]] }
 0x537   : > { %s2064_s26 = sld [smem:[#allocation22_spill]] }
 0x53b   : > { %p25_p3 = scmp.ge.s32.totalorder %s2062_s27, 4  }
 0x53c   : > { %s2066_s25 = smov %s2063_s21 }
 0x53d   :  { %27 = sbr.rel (!%p25_p3) target bundleno = 13 (0xd), region = 129 }
 0x542   :  { %928 = vsyncpa [#allocation3], 1 }
 0x543   :  { %930 = vsyncpa [#allocation3 + $0x1], 1 }
 0x544   :  { %931 = vsyncpa [#allocation6], 1 }
 0x545   :  { %933 = vsyncpa [#allocation6 + $0x1], 1 }
 0x546   :  { %934 = vsyncpa [#allocation9], 1 }
 0x547   :  { %935 = vsyncpa [#allocation12], 1 }
 0x548   :  { %936 = vsyncpa [#allocation4], 1 }
 0x549   :  { %938 = vsyncpa [#allocation4 + $0x1], 1 }

</bundles_post_ra>
